<compile_context>
chip_gen: v6e
topology: v6e:2x2x1
jax: 0.10.0
libtpu: 0.0.40
codegen_flags: <defaults>
</compile_context>

<pallas_src>
import functools

import jax
import jax.numpy as jnp
from jax.experimental import pallas as pl
from jax.experimental.pallas import tpu as pltpu

HIDDEN = 100          # nn.Linear(state_dim, 100)
HIDDEN_PAD = 128      # lane-dense padded hidden width
LN_EPS = 1e-5         # nn.LayerNorm default eps


def _round_up(x, m):
    return ((x + m - 1) // m) * m


def critic_kernel(s_ref, w1_ref, b1_ref, g_ref, beta_ref, w2_ref, b2_ref, o_ref):
    # ---- fc1: (TB, D) @ (D, Hp) + (1, Hp) --------------------------------
    # Padded w1 columns / b1 lanes are zero, so h == 0 on the padded lanes.
    h = jnp.dot(s_ref[...], w1_ref[...], preferred_element_type=jnp.float32)
    h = jnp.maximum(h + b1_ref[...], 0.0)                      # ReLU

    # ---- LayerNorm over the true 100-wide hidden dim (masked statistics) --
    lane = jax.lax.broadcasted_iota(jnp.int32, (1, HIDDEN_PAD), 1)
    valid = lane < HIDDEN                                      # (1, Hp) mask
    inv_n = jnp.float32(1.0 / HIDDEN)

    mean = jnp.sum(h, axis=-1, keepdims=True) * inv_n          # pads are 0 -> sum exact
    centered = jnp.where(valid, h - mean, 0.0)                 # keep pads at 0 for var
    var = jnp.sum(centered * centered, axis=-1, keepdims=True) * inv_n
    xhat = centered * jax.lax.rsqrt(var + LN_EPS)
    x = xhat * g_ref[...] + beta_ref[...]                      # padded lanes stay 0

    # ---- fc2 as VPU multiply + lane reduce (avoids an N=1 MXU matmul) -----
    out = jnp.sum(x * w2_ref[...], axis=-1, keepdims=True) + b2_ref[0, 0]
    o_ref[...] = out.astype(o_ref.dtype)


@functools.partial(jax.jit, static_argnames=("tb",))
def critic_forward(s, w1, b1, gamma, beta, w2, b2, *, tb=512):
    """s: (B, state_dim) float32 -> (B, 1) float32 (same semantics as the PyTorch Critic)."""
    B, D = s.shape
    H = w1.shape[1]
    hp = HIDDEN_PAD
    pad_h = hp - H

    # Lane-pad all hidden-sized params with zeros (keeps the math exact).
    w1p = jnp.pad(w1, ((0, 0), (0, pad_h)))
    b1p = jnp.pad(b1, (0, pad_h)).reshape(1, hp)
    gp = jnp.pad(gamma, (0, pad_h)).reshape(1, hp)
    betap = jnp.pad(beta, (0, pad_h)).reshape(1, hp)
    w2p = jnp.pad(w2.reshape(-1), (0, pad_h)).reshape(1, hp)   # (H, 1) -> lane-dense (1, Hp)
    b2_2d = b2.reshape(1, 1)

    # Batch tiling: TB rows per grid step, batch zero-padded to a multiple of TB.
    TB = min(_round_up(tb, 8), _round_up(B, 8))
    Bp = _round_up(B, TB)
    s_p = jnp.pad(s, ((0, Bp - B), (0, 0))) if Bp != B else s
    grid = (Bp // TB,)

    # VMEM budget: double-buffered activation tiles + resident weights + margin,
    # clamped to stay inside v7x's 32 MiB scoped default.
    vmem_bytes = 4 * (2 * TB * D + 2 * TB * 8 + 2 * TB * hp + D * hp + 4 * hp)
    vmem_bytes = min(max(vmem_bytes + (4 << 20), 8 << 20), 32 << 20)

    resident = lambda shape: pl.BlockSpec(shape, lambda i: (0,) * len(shape))

    out = pl.pallas_call(
        critic_kernel,
        out_shape=jax.ShapeDtypeStruct((Bp, 1), jnp.float32),
        grid=grid,
        in_specs=[
            pl.BlockSpec((TB, D), lambda i: (i, 0)),            # s: pipelined batch tiles
            resident((D, hp)),                                  # w1 (VMEM-resident)
            resident((1, hp)),                                  # b1
            resident((1, hp)),                                  # gamma
            resident((1, hp)),                                  # beta
            resident((1, hp)),                                  # w2 as a lane-dense row
            pl.BlockSpec(memory_space=pltpu.MemorySpace.SMEM),  # b2 scalar in SMEM
        ],
        out_specs=pl.BlockSpec((TB, 1), lambda i: (i, 0)),
        compiler_params=pltpu.CompilerParams(
            dimension_semantics=("parallel",),                  # megacore shard on v7x
            vmem_limit_bytes=vmem_bytes,
        ),
    )(s_p, w1p, b1p, gp, betap, w2p, b2_2d)
    return out[:B]


def init_critic_params(key, state_dim):
    """Deterministic synthetic init (PyTorch-style uniform fan-in bounds)."""
    k1, k2, k3, k4 = jax.random.split(key, 4)
    bound1 = 1.0 / jnp.sqrt(state_dim)
    w1 = jax.random.uniform(k1, (state_dim, HIDDEN), jnp.float32, -bound1, bound1)
    b1 = jax.random.uniform(k2, (HIDDEN,), jnp.float32, -bound1, bound1)
    bound2 = 1.0 / jnp.sqrt(HIDDEN)
    w2 = jax.random.uniform(k3, (HIDDEN, 1), jnp.float32, -bound2, bound2)
    b2 = jax.random.uniform(k4, (1,), jnp.float32, -bound2, bound2)
    gamma = jnp.ones((HIDDEN,), jnp.float32)   # LayerNorm weight init
    beta = jnp.zeros((HIDDEN,), jnp.float32)   # LayerNorm bias init
    return w1, b1, gamma, beta, w2, b2


def critic_ref(s, w1, b1, gamma, beta, w2, b2):
    """Pure-JAX reference for correctness check."""
    h = jnp.maximum(s @ w1 + b1, 0.0)
    mean = h.mean(-1, keepdims=True)
    var = ((h - mean) ** 2).mean(-1, keepdims=True)
    x = (h - mean) * jax.lax.rsqrt(var + LN_EPS) * gamma + beta
    return x @ w2 + b2


if __name__ == "__main__":
    key = jax.random.PRNGKey(0)
    k_in, k_par = jax.random.split(key)

    batch, state_dim = 8, 32
    s = jax.random.normal(k_in, (batch, state_dim), jnp.float32)
    params = init_critic_params(k_par, state_dim)

    out = critic_forward(s, *params)
    out = jax.block_until_ready(out)

    ref = critic_ref(s, *params)
    assert out.shape == (batch, 1)
    assert jnp.allclose(out, ref, atol=1e-5, rtol=1e-5), "mismatch vs reference"

    print("KERNEL_OK")
</pallas_src>

<mosaic_0001>
module attributes {stable_mosaic.version = 11 : i64} {
  func.func @critic_kernel(%arg0: i32, %arg1: memref<8x32xf32, #tpu.memory_space<vmem>>, %arg2: memref<32x128xf32, #tpu.memory_space<vmem>>, %arg3: memref<1x128xf32, #tpu.memory_space<vmem>>, %arg4: memref<1x128xf32, #tpu.memory_space<vmem>>, %arg5: memref<1x128xf32, #tpu.memory_space<vmem>>, %arg6: memref<1x128xf32, #tpu.memory_space<vmem>>, %arg7: memref<1x1xf32, #tpu.memory_space<smem>>, %arg8: memref<8x1xf32, #tpu.memory_space<vmem>>) attributes {dimension_semantics = [#tpu.dimension_semantics<parallel>], iteration_bounds = array<i64: 1>, scalar_prefetch = 0 : i64, scratch_operands = 0 : i64, tpu.core_type = #tpu.core_type<tc>, window_params = [{transform_indices = @transform_0, window_bounds = array<i64: 8, 32>}, {pipeline_mode = #tpu.pipeline_mode<synchronous>, transform_indices = @transform_1, window_bounds = array<i64: 32, 128>}, {pipeline_mode = #tpu.pipeline_mode<synchronous>, transform_indices = @transform_2, window_bounds = array<i64: 1, 128>}, {pipeline_mode = #tpu.pipeline_mode<synchronous>, transform_indices = @transform_3, window_bounds = array<i64: 1, 128>}, {pipeline_mode = #tpu.pipeline_mode<synchronous>, transform_indices = @transform_4, window_bounds = array<i64: 1, 128>}, {pipeline_mode = #tpu.pipeline_mode<synchronous>, transform_indices = @transform_5, window_bounds = array<i64: 1, 128>}, {transform_indices = @transform_6, window_bounds = array<i64: 1, 1>}, {transform_indices = @transform_7, window_bounds = array<i64: 8, 1>}]} {
    %c0 = arith.constant 0 : index
    %c0_0 = arith.constant 0 : index
    %0 = vector.load %arg1[%c0, %c0_0] : memref<8x32xf32, #tpu.memory_space<vmem>>, vector<8x32xf32>
    %c0_1 = arith.constant 0 : index
    %c0_2 = arith.constant 0 : index
    %1 = vector.load %arg2[%c0_1, %c0_2] : memref<32x128xf32, #tpu.memory_space<vmem>>, vector<32x128xf32>
    %cst = arith.constant dense<0.000000e+00> : vector<8x128xf32>
    %2 = tpu.matmul %0, %1, %cst {dimension_numbers = #tpu.dot_dimension_numbers<[1], [0], [0], [1], [0, 0, 1, 1], [], []>} : vector<8x32xf32>, vector<32x128xf32>, vector<8x128xf32> -> vector<8x128xf32>
    %c0_3 = arith.constant 0 : index
    %c0_4 = arith.constant 0 : index
    %3 = vector.load %arg3[%c0_3, %c0_4] : memref<1x128xf32, #tpu.memory_space<vmem>>, vector<1x128xf32>
    %4 = vector.broadcast %3 : vector<1x128xf32> to vector<8x128xf32>
    %5 = arith.addf %2, %4 : vector<8x128xf32>
    %cst_5 = arith.constant 0.000000e+00 : f32
    %6 = vector.broadcast %cst_5 : f32 to vector<8x128xf32>
    %7 = arith.maximumf %5, %6 : vector<8x128xf32>
    %8 = tpu.iota {dimensions = array<i32: 1>} : vector<1x128xi32>
    %c100_i32 = arith.constant 100 : i32
    %9 = vector.broadcast %c100_i32 : i32 to vector<1x128xi32>
    %10 = arith.cmpi slt, %8, %9 : vector<1x128xi32>
    %cst_6 = arith.constant dense<0.000000e+00> : vector<8xf32>
    %11 = vector.multi_reduction <add>, %7, %cst_6 [1] : vector<8x128xf32> to vector<8xf32>
    %12 = vector.shape_cast %11 : vector<8xf32> to vector<8x1xf32>
    %cst_7 = arith.constant 0.00999999977 : f32
    %13 = vector.broadcast %cst_7 : f32 to vector<8x1xf32>
    %14 = arith.mulf %12, %13 : vector<8x1xf32>
    %15 = vector.broadcast %14 : vector<8x1xf32> to vector<8x128xf32>
    %16 = arith.subf %7, %15 : vector<8x128xf32>
    %cst_8 = arith.constant 0.000000e+00 : f32
    %17 = vector.shape_cast %10 : vector<1x128xi1> to vector<1x128xi1>
    %18 = vector.broadcast %17 : vector<1x128xi1> to vector<8x128xi1>
    %19 = vector.broadcast %cst_8 : f32 to vector<8x128xf32>
    %20 = arith.select %18, %16, %19 : vector<8x128xi1>, vector<8x128xf32>
    %21 = arith.mulf %20, %20 : vector<8x128xf32>
    %cst_9 = arith.constant dense<0.000000e+00> : vector<8xf32>
    %22 = vector.multi_reduction <add>, %21, %cst_9 [1] : vector<8x128xf32> to vector<8xf32>
    %23 = vector.shape_cast %22 : vector<8xf32> to vector<8x1xf32>
    %cst_10 = arith.constant 0.00999999977 : f32
    %24 = vector.broadcast %cst_10 : f32 to vector<8x1xf32>
    %25 = arith.mulf %23, %24 : vector<8x1xf32>
    %cst_11 = arith.constant 9.99999974E-6 : f32
    %26 = vector.broadcast %cst_11 : f32 to vector<8x1xf32>
    %27 = arith.addf %25, %26 : vector<8x1xf32>
    %28 = math.rsqrt %27 : vector<8x1xf32>
    %29 = vector.broadcast %28 : vector<8x1xf32> to vector<8x128xf32>
    %30 = arith.mulf %20, %29 : vector<8x128xf32>
    %c0_12 = arith.constant 0 : index
    %c0_13 = arith.constant 0 : index
    %31 = vector.load %arg4[%c0_12, %c0_13] : memref<1x128xf32, #tpu.memory_space<vmem>>, vector<1x128xf32>
    %32 = vector.broadcast %31 : vector<1x128xf32> to vector<8x128xf32>
    %33 = arith.mulf %30, %32 : vector<8x128xf32>
    %c0_14 = arith.constant 0 : index
    %c0_15 = arith.constant 0 : index
    %34 = vector.load %arg5[%c0_14, %c0_15] : memref<1x128xf32, #tpu.memory_space<vmem>>, vector<1x128xf32>
    %35 = vector.broadcast %34 : vector<1x128xf32> to vector<8x128xf32>
    %36 = arith.addf %33, %35 : vector<8x128xf32>
    %c0_16 = arith.constant 0 : index
    %c0_17 = arith.constant 0 : index
    %37 = vector.load %arg6[%c0_16, %c0_17] : memref<1x128xf32, #tpu.memory_space<vmem>>, vector<1x128xf32>
    %38 = vector.broadcast %37 : vector<1x128xf32> to vector<8x128xf32>
    %39 = arith.mulf %36, %38 : vector<8x128xf32>
    %cst_18 = arith.constant dense<0.000000e+00> : vector<8xf32>
    %40 = vector.multi_reduction <add>, %39, %cst_18 [1] : vector<8x128xf32> to vector<8xf32>
    %41 = vector.shape_cast %40 : vector<8xf32> to vector<8x1xf32>
    %c0_19 = arith.constant 0 : index
    %c0_20 = arith.constant 0 : index
    %42 = memref.load %arg7[%c0_19, %c0_20] : memref<1x1xf32, #tpu.memory_space<smem>>
    %43 = vector.broadcast %42 : f32 to vector<8x1xf32>
    %44 = arith.addf %41, %43 : vector<8x1xf32>
    %c0_21 = arith.constant 0 : index
    %c0_22 = arith.constant 0 : index
    %45 = vector.load %arg8[%c0_21, %c0_22] : memref<8x1xf32, #tpu.memory_space<vmem>>, vector<8x1xf32>
    tpu.vector_store %arg8[%c0_21, %c0_22], %44 {strides = array<i32>} : memref<8x1xf32, #tpu.memory_space<vmem>>, vector<8x1xf32>,
    return
  }
  func.func @transform_0(%arg0: i32) -> (i32, i32) {
    %c0_i32 = arith.constant 0 : i32
    %c0_i32_0 = arith.constant 0 : i32
    return %arg0, %c0_i32 : i32, i32
  }
  func.func @transform_1(%arg0: i32) -> (i32, i32) {
    %c0_i32 = arith.constant 0 : i32
    %c0_i32_0 = arith.constant 0 : i32
    %c0_i32_1 = arith.constant 0 : i32
    return %c0_i32, %c0_i32_0 : i32, i32
  }
  func.func @transform_2(%arg0: i32) -> (i32, i32) {
    %c0_i32 = arith.constant 0 : i32
    %c0_i32_0 = arith.constant 0 : i32
    %c0_i32_1 = arith.constant 0 : i32
    return %c0_i32, %c0_i32_0 : i32, i32
  }
  func.func @transform_3(%arg0: i32) -> (i32, i32) {
    %c0_i32 = arith.constant 0 : i32
    %c0_i32_0 = arith.constant 0 : i32
    %c0_i32_1 = arith.constant 0 : i32
    return %c0_i32, %c0_i32_0 : i32, i32
  }
  func.func @transform_4(%arg0: i32) -> (i32, i32) {
    %c0_i32 = arith.constant 0 : i32
    %c0_i32_0 = arith.constant 0 : i32
    %c0_i32_1 = arith.constant 0 : i32
    return %c0_i32, %c0_i32_0 : i32, i32
  }
  func.func @transform_5(%arg0: i32) -> (i32, i32) {
    %c0_i32 = arith.constant 0 : i32
    %c0_i32_0 = arith.constant 0 : i32
    %c0_i32_1 = arith.constant 0 : i32
    return %c0_i32, %c0_i32_0 : i32, i32
  }
  func.func @transform_6(%arg0: i32) -> (i32, i32) {
    %c0_i32 = arith.constant 0 : i32
    %c0_i32_0 = arith.constant 0 : i32
    %c0_i32_1 = arith.constant 0 : i32
    return %c0_i32, %c0_i32_0 : i32, i32
  }
  func.func @transform_7(%arg0: i32) -> (i32, i32) {
    %c0_i32 = arith.constant 0 : i32
    %c0_i32_0 = arith.constant 0 : i32
    return %arg0, %c0_i32 : i32, i32
  }
}

</mosaic_0001>

<bundles_post_ra>
// kernel: critic_forward.1
= control target key start
LH: loop header
LB: loop body
LE: loop exit
PB: predicated region body
PF: predicated region fallthrough
CT: control target
= control target key end

     0   :  { %v191_v0 = vmov 0.0   ;;  %vm192_vm0 = vmmov 0   ;;  %vm39_vm1 = vcmask 261120   ;;  %v114_v11 = vlaneseq  ;;  %s266_s1 = inlined_call_operand.vmem [shape: f32[32,128], index: 1, kind: input, shape index: {}]   ;;  %s267_s0 = inlined_call_operand.vmem [shape: f32[8,32], index: 0, kind: input, shape index: {}]   ;;  %s268_s2 = inlined_call_operand.vmem [shape: f32[1,128], index: 2, kind: input, shape index: {}]   ;;  %s269_s3 = inlined_call_operand.vmem [shape: f32[1,128], index: 3, kind: input, shape index: {}]   ;;  %s270_s4 = inlined_call_operand.vmem [shape: f32[1,128], index: 4, kind: input, shape index: {}]   ;;  %s271_s5 = inlined_call_operand.vmem [shape: f32[1,128], index: 5, kind: input, shape index: {}]   ;;  %s272_s6 = inlined_call_operand.<no memory space> [shape: f32[1,1], index: 6, kind: input, shape index: {}]   ;;  %s273_s7 = inlined_call_operand.vmem [shape: f32[8,1], index: 7, kind: output, shape index: {}]  }
   0x1   :  { %176 = vmatprep.subr.mxu0 %v191_v0  ;;  %v31_v1 = vld [vmem:[%s266_s1 + $0x18] sm:$0xff]  ;;  %v30_v2 = vld [vmem:[%s266_s1 + $0x10] sm:$0xff]  ;;  %184 = vmatprep.mubr.msk.f32.mxu0 %vm192_vm0, %v191_v0  ;;  %v29_v3 = vld [vmem:[%s266_s1 + $0x8] sm:$0xff]  ;;  %v158_v29 = vstv %s272_s6  ;;  %vm160_vm3 = vcmask 7168  }
   0x2   :  { %177 = vmatpush3.msra.mxu0 %v31_v1  ;;  %v28_v4 = vld [vmem:[%s266_s1] sm:$0xff]  ;;  %v115_v12 = vand.u32 127, %v114_v11 }
   0x3   :  { %178 = vmatprep.subr.mxu0 %v191_v0  ;;  %v27_v5 = vld [vmem:[%s267_s0] sm:$0xff] }
   0x4   :  { %179 = vmatpush3.msra.mxu0 %v30_v2  ;;  %v166_v6 = vld [vmem:[%s268_s2] ss:$0 sm:$0xff]  ;;  %vm116_vm2 = vcmp.lt.s32.totalorder %v115_v12, 100 }
   0x5   :  { %180 = vmatprep.subr.mxu0 %v191_v0  ;;  %v168_v22 = vld [vmem:[%s269_s3] ss:$0 sm:$0xff] }
   0x6   :  { %181 = vmatpush3.msra.mxu0 %v29_v3  ;;  %v169_v24 = vld [vmem:[%s270_s4] ss:$0 sm:$0xff] }
   0x7   :  { %182 = vmatprep.subr.mxu0 %v191_v0  ;;  %v170_v26 = vld [vmem:[%s271_s5] ss:$0 sm:$0xff] }
   0x8   :  { %183 = vmatpush3.msra.mxu0 %v28_v4 }
   0x9   :  { %185 = vmatmul.mubr.msk.f32.vlgmr.msra.gmra.mxu0 %vm39_vm1, %v27_v5 }
  0xc9   :  { %v109_v7 = vpop.f32.mrf.mxu0 }
  0xca   :  { %v110_v8 = vadd.f32 %v166_v6, %v109_v7 }
  0xcb   :  { %v186_v9 = vpop.f32.mrf.mxu0 }
  0xcc   :  { %v113_v10 = vmax.f32 %v110_v8, 0.0 }
  0xce   :  { %117 = vadd.xlane.f32.xlu0 %v113_v10 }
 0x157   :  { %v118_v13 = vpop.xlane.xlu0 %117 }
 0x158   :  { %v119_v14 = vmul.f32 0.01, %v118_v13 }
 0x15a   :  { %v120_v15 = vsub.f32 %v113_v10, %v119_v14 }
 0x15c   :  { %v123_v16 = vsel %vm116_vm2, %v120_v15, 0.0 }
 0x15d   :  { %v124_v17 = vmul.f32 %v123_v16, %v123_v16 }
 0x15f   :  { %125 = vadd.xlane.f32.xlu0 %v124_v17 }
 0x1e8   :  { %v126_v18 = vpop.xlane.xlu0 %125 }
 0x1e9   :  { %v127_v19 = vmul.f32 0.01, %v126_v18 }
 0x1eb   :  { %v128_v20 = vadd.f32 1e-05, %v127_v19 }
 0x1ed   :  { %189 = vrsqrt.f32 %v128_v20 }
 0x1fa   :  { %v190_v21 = vpop.eup %189 }
 0x1fb   :  { %v130_v23 = vmul.f32 %v190_v21, %v123_v16 }
 0x1fd   :  { %v138_v25 = vmul.f32 %v168_v22, %v130_v23 }
 0x1ff   :  { %v146_v27 = vadd.f32 %v169_v24, %v138_v25 }
 0x201   :  { %v154_v28 = vmul.f32 %v170_v26, %v146_v27 }
 0x203   :  { %155 = vadd.xlane.f32.xlu1 %v154_v28 }
 0x28c   :  { %v156_v30 = vpop.xlane.xlu1 %155 }
 0x28d   :  { %v159_v31 = vadd.f32 %v158_v29, %v156_v30 }
 0x28f   :  { %161 = vst.msk [vmem:[%s273_s7] sm:$0xff] %vm160_vm3, %v159_v31 }

</bundles_post_ra>
